<compile_context>
chip_gen: v7x
topology: tpu7x:2x2x1
jax: 0.10.0
libtpu: 0.0.40
codegen_flags: <defaults>
</compile_context>

<pallas_src>
import functools

import jax
import jax.numpy as jnp
from jax import lax
from jax.experimental import pallas as pl
from jax.experimental.pallas import tpu as pltpu


# ---------------------------------------------------------------------------
# Tile / VMEM sizing helpers
# ---------------------------------------------------------------------------
def _vmem_limit_bytes():
    """Scoped-VMEM request sized per generation (64 MiB physical on v7x,
    128 MiB on v5e/v6e), with headroom left for the compiler."""
    cap = 64 * 1024 * 1024  # safe fallback (v7x physical)
    try:
        info = pltpu.get_tpu_info()
        cap = int(getattr(info, "vmem_capacity_bytes", cap)) or cap
    except Exception:
        pass
    return min(int(cap * 0.7), 100 * 1024 * 1024)


def _sublane(dtype):
    """Native sublane packing: 8 rows for 4-byte, 16 for 2-byte, 32 for 1-byte."""
    return {4: 8, 2: 16, 1: 32}.get(jnp.dtype(dtype).itemsize, 8)


def _channel_tile(C, sub):
    """Sublane tile for the streaming/apply passes: multiple of `sub`, or the
    full dim when C <= sub."""
    if C <= sub:
        return C
    if C % sub == 0:
        return min(8 * sub, C)
    return sub


def _lane_tile(HW, tc, itemsize):
    """Lane tile: full dim when it fits the target, else a multiple of 128
    targeting ~4 MiB of f32 per input block (amortizes per-step overhead
    while 2 in + 2 out pipeline buffers still fit the VMEM limit)."""
    target_bytes = 4 << 20
    target = max(2048, (target_bytes // (4 * tc)) // 128 * 128)
    return HW if HW <= target else target


def _resident_vmem_need(N, tc, HW, itemsize):
    """VMEM needed by the resident path for one channel tile: 2 input + 2
    output pipeline buffers in input dtype, plus ~3 per-N-slice f32
    temporaries (the kernel streams over N, never a full f32 slab)."""
    block = N * tc * HW * itemsize
    slice_f32 = tc * HW * 4
    return 4 * block + 3 * slice_f32


def _pick_resident_tc(C, N, HW, itemsize, budget, sub):
    """Largest channel tile (multiple of `sub`, or full C when C <= sub) whose
    resident working set fits `budget`, preferring >= 4 channel tiles so both
    v7x TensorCores get work and the grid pipeline can overlap DMA/compute."""
    if C <= sub:
        tc = C
        return tc, _resident_vmem_need(N, tc, HW, itemsize) <= budget

    cands = list(range(sub, (C // sub) * sub + 1, sub))
    if _resident_vmem_need(N, sub, HW, itemsize) > budget:
        return sub, False
    target_tiles = min(4, pl.cdiv(C, sub))
    for tc in reversed(cands):
        if (_resident_vmem_need(N, tc, HW, itemsize) <= budget
                and pl.cdiv(C, tc) >= target_tiles):
            return tc, True
    # Fallback (unreachable in practice since tc=sub satisfies both).
    return sub, True


# ---------------------------------------------------------------------------
# Kernels
# ---------------------------------------------------------------------------
def _bn2d_train_resident_kernel(x_ref, w_ref, b_ref, y_ref, mean_ref, var_ref,
                                *, eps, inv_m):
    """Fused training batchnorm for one channel slab.

    x_ref/y_ref: (N, tc, HW); w_ref/b_ref/mean_ref/var_ref: (tc, 1).
    One HBM read of x + one HBM write of y. Streams over N so the f32
    working set is one (tc, HW) slice at a time (no full-slab temporaries).
    """
    n = x_ref.shape[0]
    tc = x_ref.shape[1]
    unroll = n <= 8

    def stats_body(i, carry):
        s, ssq = carry
        xs = x_ref[i].astype(jnp.float32)                    # (tc, HW)
        return (s + jnp.sum(xs, axis=-1, keepdims=True),
                ssq + jnp.sum(xs * xs, axis=-1, keepdims=True))

    zero = jnp.zeros((tc, 1), jnp.float32)
    s, ssq = lax.fori_loop(0, n, stats_body, (zero, zero), unroll=unroll)

    m = s * inv_m                                            # (tc, 1)
    v = jnp.maximum(ssq * inv_m - m * m, 0.0)                # biased, >= 0
    scale = w_ref[...] * lax.rsqrt(v + eps)                  # (tc, 1)
    shift = b_ref[...] - m * scale

    def apply_body(i, carry):
        xs = x_ref[i].astype(jnp.float32)
        y_ref[i] = (xs * scale + shift).astype(y_ref.dtype)
        return carry

    lax.fori_loop(0, n, apply_body, 0, unroll=unroll)
    mean_ref[...] = m
    var_ref[...] = v


def _bn2d_stats_kernel(x_ref, w_ref, b_ref,
                       mean_ref, var_ref, scale_ref, shift_ref,
                       *, hw, t_hw, inv_m, eps, needs_mask):
    """Streaming per-channel sum / sum-of-squares.

    Grid = (C_tiles, N, HW_tiles); reduction over the last two (arbitrary)
    axes; mean_ref / var_ref are resident f32 output blocks used as
    accumulators (P3 init/finalize). The finalize step converts them in
    place to mean / biased variance and also emits per-channel
    scale = w * rsqrt(var+eps) and shift = b - mean*scale, so the apply pass
    needs no XLA glue in between. The lane mask for a padded last HW tile is
    only applied on that last tile.
    """
    n_i = pl.program_id(1)
    hw_i = pl.program_id(2)

    @pl.when(jnp.logical_and(n_i == 0, hw_i == 0))
    def _init():
        mean_ref[...] = jnp.zeros_like(mean_ref)
        var_ref[...] = jnp.zeros_like(var_ref)

    x = x_ref[0].astype(jnp.float32)                         # (tc, t_hw)

    def accumulate(xv):
        mean_ref[...] += jnp.sum(xv, axis=1, keepdims=True)
        var_ref[...] += jnp.sum(xv * xv, axis=1, keepdims=True)

    if needs_mask:
        last_hw = pl.num_programs(2) - 1

        @pl.when(hw_i != last_hw)
        def _full_tile():
            accumulate(x)

        @pl.when(hw_i == last_hw)
        def _masked_tile():
            lane = lax.broadcasted_iota(jnp.int32, x.shape, 1) + hw_i * t_hw
            accumulate(jnp.where(lane < hw, x, 0.0))
    else:
        accumulate(x)

    is_last = jnp.logical_and(n_i == pl.num_programs(1) - 1,
                              hw_i == pl.num_programs(2) - 1)

    @pl.when(is_last)
    def _finalize():
        s = mean_ref[...]
        ssq = var_ref[...]
        m = s * inv_m
        v = jnp.maximum(ssq * inv_m - m * m, 0.0)            # biased, >= 0
        mean_ref[...] = m                                    # -> mean
        var_ref[...] = v                                     # -> variance
        sc = w_ref[...] * lax.rsqrt(v + eps)
        scale_ref[...] = sc
        shift_ref[...] = b_ref[...] - m * sc


def _bn2d_apply_kernel(x_ref, scale_ref, shift_ref, y_ref):
    """Elementwise y = x * scale + shift with per-channel scale/shift.

    x_ref/y_ref: (1, tc, t_hw); scale_ref/shift_ref: (tc, 1).
    """
    x = x_ref[0].astype(jnp.float32)                         # (tc, t_hw)
    y_ref[0] = (x * scale_ref[...] + shift_ref[...]).astype(y_ref.dtype)


# ---------------------------------------------------------------------------
# pallas_call wrappers
# ---------------------------------------------------------------------------
def _apply_affine(x3, scale, shift, *, tc, t_hw, vmem_limit):
    """Tiled elementwise normalize pass over (N, C, HW)."""
    N, C, HW = x3.shape
    xbytes = int(x3.size) * x3.dtype.itemsize
    return pl.pallas_call(
        _bn2d_apply_kernel,
        grid=(pl.cdiv(C, tc), N, pl.cdiv(HW, t_hw)),
        in_specs=[
            pl.BlockSpec((1, tc, t_hw), lambda c, n, h: (n, c, h)),
            pl.BlockSpec((tc, 1), lambda c, n, h: (c, 0)),
            pl.BlockSpec((tc, 1), lambda c, n, h: (c, 0)),
        ],
        out_specs=pl.BlockSpec((1, tc, t_hw), lambda c, n, h: (n, c, h)),
        out_shape=jax.ShapeDtypeStruct((N, C, HW), x3.dtype),
        compiler_params=pltpu.CompilerParams(
            dimension_semantics=("parallel", "parallel", "parallel"),
            vmem_limit_bytes=vmem_limit),
        cost_estimate=pl.CostEstimate(
            flops=2 * int(x3.size), transcendentals=0,
            bytes_accessed=2 * xbytes),
    )(x3, scale, shift)


def batchnorm2d_forward(
    x,
    weight,
    bias,
    running_mean,
    running_var,
    num_batches_tracked,
    *,
    eps=1e-5,
    momentum=0.1,
    training=True,
    max_resident_bytes=None,
):
    """x: (N, C, H, W). Returns (y, new_running_mean, new_running_var,
    new_num_batches_tracked)."""
    N, C, H, W = x.shape
    HW = H * W
    M = N * HW

    # Free layout change: NCHW -> (N, C, H*W). No HBM transpose.
    x3 = x.reshape(N, C, HW)
    itemsize = x.dtype.itemsize
    xbytes = int(x3.size) * itemsize

    vmem_limit = _vmem_limit_bytes()
    if max_resident_bytes is None:
        max_resident_bytes = int(vmem_limit * 0.85)

    sub = _sublane(x.dtype)
    w32 = weight.astype(jnp.float32).reshape(C, 1)
    b32 = bias.astype(jnp.float32).reshape(C, 1)

    if training:
        tc_res, use_resident = _pick_resident_tc(
            C, N, HW, itemsize, max_resident_bytes, sub)

        if use_resident:
            c_tiles = pl.cdiv(C, tc_res)
            y3, m2, v2 = pl.pallas_call(
                functools.partial(_bn2d_train_resident_kernel,
                                  eps=eps, inv_m=1.0 / M),
                grid=(c_tiles,),
                in_specs=[
                    pl.BlockSpec((N, tc_res, HW), lambda c: (0, c, 0)),
                    pl.BlockSpec((tc_res, 1), lambda c: (c, 0)),
                    pl.BlockSpec((tc_res, 1), lambda c: (c, 0)),
                ],
                out_specs=(
                    pl.BlockSpec((N, tc_res, HW), lambda c: (0, c, 0)),
                    pl.BlockSpec((tc_res, 1), lambda c: (c, 0)),
                    pl.BlockSpec((tc_res, 1), lambda c: (c, 0)),
                ),
                out_shape=(
                    jax.ShapeDtypeStruct((N, C, HW), x.dtype),
                    jax.ShapeDtypeStruct((C, 1), jnp.float32),
                    jax.ShapeDtypeStruct((C, 1), jnp.float32),
                ),
                compiler_params=pltpu.CompilerParams(
                    dimension_semantics=("parallel",),
                    vmem_limit_bytes=vmem_limit),
                cost_estimate=pl.CostEstimate(
                    flops=5 * int(x3.size), transcendentals=int(C),
                    bytes_accessed=2 * xbytes),
            )(x3, w32, b32)
            m = m2.reshape(C)
            v = v2.reshape(C)
        else:
            # Streaming: stats pass (emits mean/var/scale/shift) + apply pass.
            tc = _channel_tile(C, sub)
            t_hw = _lane_tile(HW, tc, itemsize)
            hw_tiles = pl.cdiv(HW, t_hw)
            needs_mask = (HW % t_hw) != 0
            small_spec = [pl.BlockSpec((tc, 1), lambda c, n, h: (c, 0))
                          for _ in range(4)]
            m2, v2, scale2, shift2 = pl.pallas_call(
                functools.partial(_bn2d_stats_kernel,
                                  hw=HW, t_hw=t_hw, inv_m=1.0 / M,
                                  eps=eps, needs_mask=needs_mask),
                grid=(pl.cdiv(C, tc), N, hw_tiles),
                in_specs=[
                    pl.BlockSpec((1, tc, t_hw), lambda c, n, h: (n, c, h)),
                    pl.BlockSpec((tc, 1), lambda c, n, h: (c, 0)),
                    pl.BlockSpec((tc, 1), lambda c, n, h: (c, 0)),
                ],
                out_specs=tuple(small_spec),
                out_shape=tuple(
                    jax.ShapeDtypeStruct((C, 1), jnp.float32)
                    for _ in range(4)),
                compiler_params=pltpu.CompilerParams(
                    dimension_semantics=("parallel", "arbitrary", "arbitrary"),
                    vmem_limit_bytes=vmem_limit),
                cost_estimate=pl.CostEstimate(
                    flops=3 * int(x3.size), transcendentals=int(C),
                    bytes_accessed=xbytes),
            )(x3, w32, b32)
            m = m2.reshape(C)
            v = v2.reshape(C)
            y3 = _apply_affine(x3, scale2, shift2,
                               tc=tc, t_hw=t_hw, vmem_limit=vmem_limit)

        # Running-stat EMA (matches the module: biased variance, like its
        # torch.var(unbiased=False) usage).
        new_running_mean = ((1.0 - momentum) * running_mean
                            + momentum * m.astype(running_mean.dtype))
        new_running_var = ((1.0 - momentum) * running_var
                           + momentum * v.astype(running_var.dtype))
        new_nbt = num_batches_tracked + 1
    else:
        m = running_mean.astype(jnp.float32)
        v = running_var.astype(jnp.float32)
        inv_std = lax.rsqrt(v + eps)
        scale = (weight.astype(jnp.float32) * inv_std).reshape(C, 1)
        shift = (bias.astype(jnp.float32).reshape(C, 1)
                 - m.reshape(C, 1) * scale)
        tc = _channel_tile(C, sub)
        t_hw = _lane_tile(HW, tc, itemsize)
        y3 = _apply_affine(x3, scale, shift,
                           tc=tc, t_hw=t_hw, vmem_limit=vmem_limit)
        new_running_mean = running_mean
        new_running_var = running_var
        new_nbt = num_batches_tracked

    y = y3.reshape(N, C, H, W)
    return y, new_running_mean, new_running_var, new_nbt


# ---------------------------------------------------------------------------
# Pure-JAX reference of the module's forward
# ---------------------------------------------------------------------------
def _reference_forward(x, weight, bias, running_mean, running_var,
                       eps, momentum, training):
    if training:
        m = jnp.mean(x, axis=(0, 2, 3))
        v = jnp.var(x, axis=(0, 2, 3))            # biased, unbiased=False
        new_rm = (1.0 - momentum) * running_mean + momentum * m
        new_rv = (1.0 - momentum) * running_var + momentum * v
    else:
        m, v = running_mean, running_var
        new_rm, new_rv = running_mean, running_var
    mr = m.reshape(1, -1, 1, 1)
    vr = v.reshape(1, -1, 1, 1)
    y = (x - mr) / jnp.sqrt(vr + eps)
    y = y * weight.reshape(1, -1, 1, 1) + bias.reshape(1, -1, 1, 1)
    return y, new_rm, new_rv


# ---------------------------------------------------------------------------
# Demo / correctness check
# ---------------------------------------------------------------------------
if __name__ == "__main__":
    key = jax.random.PRNGKey(0)
    eps, momentum = 1e-5, 0.1

    def run_case(key, N, C, H, W):
        k1, k2, k3 = jax.random.split(key, 3)
        x = jax.random.normal(k1, (N, C, H, W), dtype=jnp.float32) * 2.0 + 0.5
        weight = 0.5 + 0.1 * jax.random.normal(k2, (C,), dtype=jnp.float32)
        bias = 0.05 * jax.random.normal(k3, (C,), dtype=jnp.float32)
        running_mean = jnp.zeros((C,), dtype=jnp.float32)
        running_var = jnp.ones((C,), dtype=jnp.float32)
        nbt = jnp.zeros((), dtype=jnp.int32)

        # Training mode: fused resident path.
        y1, rm1, rv1, nbt1 = batchnorm2d_forward(
            x, weight, bias, running_mean, running_var, nbt,
            eps=eps, momentum=momentum, training=True)
        # Training mode: forced streaming (stats + apply) path.
        y2, rm2, rv2, nbt2 = batchnorm2d_forward(
            x, weight, bias, running_mean, running_var, nbt,
            eps=eps, momentum=momentum, training=True, max_resident_bytes=0)
        jax.block_until_ready((y1, rm1, rv1, y2, rm2, rv2))

        y_ref, rm_ref, rv_ref = _reference_forward(
            x, weight, bias, running_mean, running_var, eps, momentum, True)

        assert jnp.allclose(y1, y_ref, atol=1e-5, rtol=1e-5), "resident y"
        assert jnp.allclose(y2, y_ref, atol=1e-5, rtol=1e-5), "streaming y"
        assert jnp.allclose(rm1, rm_ref, atol=1e-5, rtol=1e-5), "resident rm"
        assert jnp.allclose(rv1, rv_ref, atol=1e-5, rtol=1e-5), "resident rv"
        assert jnp.allclose(rm2, rm_ref, atol=1e-5, rtol=1e-5), "streaming rm"
        assert jnp.allclose(rv2, rv_ref, atol=1e-5, rtol=1e-5), "streaming rv"
        assert int(nbt1) == 1 and int(nbt2) == 1, "num_batches_tracked"

        # Eval mode with the updated running stats.
        ye, rme, rve, nbte = batchnorm2d_forward(
            x, weight, bias, rm1, rv1, nbt1,
            eps=eps, momentum=momentum, training=False)
        jax.block_until_ready(ye)
        ye_ref, _, _ = _reference_forward(
            x, weight, bias, rm1, rv1, eps, momentum, False)
        assert jnp.allclose(ye, ye_ref, atol=1e-5, rtol=1e-5), "eval y"
        assert jnp.allclose(rme, rm1) and jnp.allclose(rve, rv1), "eval stats"
        assert int(nbte) == 1, "eval num_batches_tracked"

    key1, key2 = jax.random.split(key)
    run_case(key1, N=2, C=4, H=16, W=16)    # tiny, C == full-dim channel tile
    run_case(key2, N=2, C=12, H=16, W=16)   # C > 8, not /8: padded C tile path

    print("KERNEL_OK")
</pallas_src>

<mosaic_0001>
module attributes {stable_mosaic.version = 11 : i64} {
  func.func @_bn2d_train_resident_kernel(%arg0: i32, %arg1: memref<2x4x256xf32, #tpu.memory_space<vmem>>, %arg2: memref<4x1xf32, #tpu.memory_space<vmem>>, %arg3: memref<4x1xf32, #tpu.memory_space<vmem>>, %arg4: memref<2x4x256xf32, #tpu.memory_space<vmem>>, %arg5: memref<4x1xf32, #tpu.memory_space<vmem>>, %arg6: memref<4x1xf32, #tpu.memory_space<vmem>>) attributes {dimension_semantics = [#tpu.dimension_semantics<parallel>], iteration_bounds = array<i64: 1>, scalar_prefetch = 0 : i64, scratch_operands = 0 : i64, tpu.core_type = #tpu.core_type<tc>, window_params = [{transform_indices = @transform_0, window_bounds = array<i64: 2, 4, 256>}, {transform_indices = @transform_1, window_bounds = array<i64: 4, 1>}, {transform_indices = @transform_2, window_bounds = array<i64: 4, 1>}, {transform_indices = @transform_3, window_bounds = array<i64: 2, 4, 256>}, {transform_indices = @transform_4, window_bounds = array<i64: 4, 1>}, {transform_indices = @transform_5, window_bounds = array<i64: 4, 1>}]} {
    %cst = arith.constant 0.000000e+00 : f32
    %0 = vector.broadcast %cst : f32 to vector<4x1xf32>
    %c0_i32 = arith.constant 0 : i32
    %1 = arith.index_cast %c0_i32 : i32 to index
    %c0 = arith.constant 0 : index
    %c0_0 = arith.constant 0 : index
    %2 = vector.load %arg1[%1, %c0, %c0_0] : memref<2x4x256xf32, #tpu.memory_space<vmem>>, vector<1x4x256xf32>
    %3 = vector.shape_cast %2 : vector<1x4x256xf32> to vector<4x256xf32>
    %cst_1 = arith.constant dense<0.000000e+00> : vector<4xf32>
    %4 = vector.multi_reduction <add>, %3, %cst_1 [1] : vector<4x256xf32> to vector<4xf32>
    %5 = vector.shape_cast %4 : vector<4xf32> to vector<4x1xf32>
    %6 = arith.addf %0, %5 : vector<4x1xf32>
    %7 = arith.mulf %3, %3 : vector<4x256xf32>
    %cst_2 = arith.constant dense<0.000000e+00> : vector<4xf32>
    %8 = vector.multi_reduction <add>, %7, %cst_2 [1] : vector<4x256xf32> to vector<4xf32>
    %9 = vector.shape_cast %8 : vector<4xf32> to vector<4x1xf32>
    %10 = arith.addf %0, %9 : vector<4x1xf32>
    %c1_i32 = arith.constant 1 : i32
    %11 = arith.index_cast %c1_i32 : i32 to index
    %c0_3 = arith.constant 0 : index
    %c0_4 = arith.constant 0 : index
    %12 = vector.load %arg1[%11, %c0_3, %c0_4] : memref<2x4x256xf32, #tpu.memory_space<vmem>>, vector<1x4x256xf32>
    %13 = vector.shape_cast %12 : vector<1x4x256xf32> to vector<4x256xf32>
    %cst_5 = arith.constant dense<0.000000e+00> : vector<4xf32>
    %14 = vector.multi_reduction <add>, %13, %cst_5 [1] : vector<4x256xf32> to vector<4xf32>
    %15 = vector.shape_cast %14 : vector<4xf32> to vector<4x1xf32>
    %16 = arith.addf %6, %15 : vector<4x1xf32>
    %17 = arith.mulf %13, %13 : vector<4x256xf32>
    %cst_6 = arith.constant dense<0.000000e+00> : vector<4xf32>
    %18 = vector.multi_reduction <add>, %17, %cst_6 [1] : vector<4x256xf32> to vector<4xf32>
    %19 = vector.shape_cast %18 : vector<4xf32> to vector<4x1xf32>
    %20 = arith.addf %10, %19 : vector<4x1xf32>
    %c2_i32 = arith.constant 2 : i32
    %cst_7 = arith.constant 0.001953125 : f32
    %21 = vector.broadcast %cst_7 : f32 to vector<4x1xf32>
    %22 = arith.mulf %16, %21 : vector<4x1xf32>
    %cst_8 = arith.constant 0.001953125 : f32
    %23 = vector.broadcast %cst_8 : f32 to vector<4x1xf32>
    %24 = arith.mulf %20, %23 : vector<4x1xf32>
    %25 = arith.mulf %22, %22 : vector<4x1xf32>
    %26 = arith.subf %24, %25 : vector<4x1xf32>
    %cst_9 = arith.constant 0.000000e+00 : f32
    %27 = vector.broadcast %cst_9 : f32 to vector<4x1xf32>
    %28 = arith.maximumf %26, %27 : vector<4x1xf32>
    %c0_10 = arith.constant 0 : index
    %c0_11 = arith.constant 0 : index
    %29 = vector.load %arg2[%c0_10, %c0_11] : memref<4x1xf32, #tpu.memory_space<vmem>>, vector<4x1xf32>
    %cst_12 = arith.constant 9.99999974E-6 : f32
    %30 = vector.broadcast %cst_12 : f32 to vector<4x1xf32>
    %31 = arith.addf %28, %30 : vector<4x1xf32>
    %32 = math.rsqrt %31 : vector<4x1xf32>
    %33 = arith.mulf %29, %32 : vector<4x1xf32>
    %c0_13 = arith.constant 0 : index
    %c0_14 = arith.constant 0 : index
    %34 = vector.load %arg3[%c0_13, %c0_14] : memref<4x1xf32, #tpu.memory_space<vmem>>, vector<4x1xf32>
    %35 = arith.mulf %22, %33 : vector<4x1xf32>
    %36 = arith.subf %34, %35 : vector<4x1xf32>
    %c0_i32_15 = arith.constant 0 : i32
    %37 = arith.index_cast %c0_i32_15 : i32 to index
    %c0_16 = arith.constant 0 : index
    %c0_17 = arith.constant 0 : index
    %38 = vector.load %arg1[%37, %c0_16, %c0_17] : memref<2x4x256xf32, #tpu.memory_space<vmem>>, vector<1x4x256xf32>
    %39 = vector.shape_cast %38 : vector<1x4x256xf32> to vector<4x256xf32>
    %40 = vector.broadcast %33 : vector<4x1xf32> to vector<4x256xf32>
    %41 = arith.mulf %39, %40 : vector<4x256xf32>
    %42 = vector.broadcast %36 : vector<4x1xf32> to vector<4x256xf32>
    %43 = arith.addf %41, %42 : vector<4x256xf32>
    %44 = arith.index_cast %c0_i32_15 : i32 to index
    %c0_18 = arith.constant 0 : index
    %c0_19 = arith.constant 0 : index
    %45 = vector.load %arg4[%44, %c0_18, %c0_19] : memref<2x4x256xf32, #tpu.memory_space<vmem>>, vector<1x4x256xf32>
    %46 = vector.shape_cast %45 : vector<1x4x256xf32> to vector<4x256xf32>
    %47 = vector.shape_cast %43 : vector<4x256xf32> to vector<1x4x256xf32>
    tpu.vector_store %arg4[%44, %c0_18, %c0_19], %47 {strides = array<i32>} : memref<2x4x256xf32, #tpu.memory_space<vmem>>, vector<1x4x256xf32>,
    %c1_i32_20 = arith.constant 1 : i32
    %48 = arith.index_cast %c1_i32_20 : i32 to index
    %c0_21 = arith.constant 0 : index
    %c0_22 = arith.constant 0 : index
    %49 = vector.load %arg1[%48, %c0_21, %c0_22] : memref<2x4x256xf32, #tpu.memory_space<vmem>>, vector<1x4x256xf32>
    %50 = vector.shape_cast %49 : vector<1x4x256xf32> to vector<4x256xf32>
    %51 = vector.broadcast %33 : vector<4x1xf32> to vector<4x256xf32>
    %52 = arith.mulf %50, %51 : vector<4x256xf32>
    %53 = vector.broadcast %36 : vector<4x1xf32> to vector<4x256xf32>
    %54 = arith.addf %52, %53 : vector<4x256xf32>
    %55 = arith.index_cast %c1_i32_20 : i32 to index
    %c0_23 = arith.constant 0 : index
    %c0_24 = arith.constant 0 : index
    %56 = vector.load %arg4[%55, %c0_23, %c0_24] : memref<2x4x256xf32, #tpu.memory_space<vmem>>, vector<1x4x256xf32>
    %57 = vector.shape_cast %56 : vector<1x4x256xf32> to vector<4x256xf32>
    %58 = vector.shape_cast %54 : vector<4x256xf32> to vector<1x4x256xf32>
    tpu.vector_store %arg4[%55, %c0_23, %c0_24], %58 {strides = array<i32>} : memref<2x4x256xf32, #tpu.memory_space<vmem>>, vector<1x4x256xf32>,
    %c2_i32_25 = arith.constant 2 : i32
    %c0_26 = arith.constant 0 : index
    %c0_27 = arith.constant 0 : index
    %59 = vector.load %arg5[%c0_26, %c0_27] : memref<4x1xf32, #tpu.memory_space<vmem>>, vector<4x1xf32>
    tpu.vector_store %arg5[%c0_26, %c0_27], %22 {strides = array<i32>} : memref<4x1xf32, #tpu.memory_space<vmem>>, vector<4x1xf32>,
    %c0_28 = arith.constant 0 : index
    %c0_29 = arith.constant 0 : index
    %60 = vector.load %arg6[%c0_28, %c0_29] : memref<4x1xf32, #tpu.memory_space<vmem>>, vector<4x1xf32>
    tpu.vector_store %arg6[%c0_28, %c0_29], %28 {strides = array<i32>} : memref<4x1xf32, #tpu.memory_space<vmem>>, vector<4x1xf32>,
    return
  }
  func.func @transform_0(%arg0: i32) -> (i32, i32, i32) {
    %c0_i32 = arith.constant 0 : i32
    %c0_i32_0 = arith.constant 0 : i32
    %c0_i32_1 = arith.constant 0 : i32
    return %c0_i32, %arg0, %c0_i32_0 : i32, i32, i32
  }
  func.func @transform_1(%arg0: i32) -> (i32, i32) {
    %c0_i32 = arith.constant 0 : i32
    %c0_i32_0 = arith.constant 0 : i32
    return %arg0, %c0_i32 : i32, i32
  }
  func.func @transform_2(%arg0: i32) -> (i32, i32) {
    %c0_i32 = arith.constant 0 : i32
    %c0_i32_0 = arith.constant 0 : i32
    return %arg0, %c0_i32 : i32, i32
  }
  func.func @transform_3(%arg0: i32) -> (i32, i32, i32) {
    %c0_i32 = arith.constant 0 : i32
    %c0_i32_0 = arith.constant 0 : i32
    %c0_i32_1 = arith.constant 0 : i32
    return %c0_i32, %arg0, %c0_i32_0 : i32, i32, i32
  }
  func.func @transform_4(%arg0: i32) -> (i32, i32) {
    %c0_i32 = arith.constant 0 : i32
    %c0_i32_0 = arith.constant 0 : i32
    return %arg0, %c0_i32 : i32, i32
  }
  func.func @transform_5(%arg0: i32) -> (i32, i32) {
    %c0_i32 = arith.constant 0 : i32
    %c0_i32_0 = arith.constant 0 : i32
    return %arg0, %c0_i32 : i32, i32
  }
}

</mosaic_0001>

<bundles_post_ra>
// kernel: tpu_custom_call.1
= control target key start
LH: loop header
LB: loop body
LE: loop exit
PB: predicated region body
PF: predicated region fallthrough
CT: control target
= control target key end

     0   :  { %11 = vsyncpa [#allocation3], 0  ;;  %s292_s0 = inlined_call_operand.hbm [shape: f32[2,4,256], index: 0, kind: input, shape index: {}]   ;;  %s293_s1 = inlined_call_operand.vmem [shape: f32[4,1], index: 1, kind: input, shape index: {}]   ;;  %s294_s2 = inlined_call_operand.vmem [shape: f32[4,1], index: 2, kind: input, shape index: {}]   ;;  %s295_s3 = inlined_call_operand.hbm [shape: f32[2,4,256], index: 3, kind: output, shape index: {0}]   ;;  %s296_s4 = inlined_call_operand.vmem [shape: f32[4,1], index: 4, kind: output, shape index: {1}]   ;;  %s297_s5 = inlined_call_operand.vmem [shape: f32[4,1], index: 5, kind: output, shape index: {2}]  }
   0x1   :  { %12 = vsyncpa [#allocation4], 0  ;;  %s206_s18 = smov [#allocation2]   ;;  %s158_s22 = scalar_lea.hbm %s292_s0, 256 }
   0x2   :  { %s18_s19 = sshll.u32 %s206_s18, 4  ;;  %p159_p0 = scmp.ne.s32.totalorder %s292_s0, %s158_s22  ;;  %s19_s19 = int_to_ptr.vmem [resolvable:$true] %s18_s19 }
   0x3   :  { %p162_p1 = scmp.lt.u32.totalorder %s158_s22, %s292_s0 }
   0x5   :  { %p164_p2 = pnand %p162_p1, %p159_p0 }
   0x7   :  { %167 = shalt.err (!%p164_p2)
}
   0x8   :  { %s168_s27 = scalar_lea.vmem %s19_s19, 256  ;;  %p173_p4 = scmp.lt.s32.totalorder %s19_s19, %s19_s19 }
   0x9   :  { %p169_p3 = scmp.ne.s32.totalorder %s19_s19, %s168_s27  ;;  %p174_p5 = scmp.lt.s32.totalorder %s168_s27, %s168_s27 }
   0xb   :  { %p175_p6 = por %p174_p5, %p173_p4 }
   0xd   :  { %p176_p7 = pnand %p175_p6, %p169_p3 }
   0xf   :  { %179 = shalt.err (!%p176_p7)
}
  0x10   :  { %s207_s28 = smov 128   ;;  %s208_s29 = smov 8  }
  0x11   :  { %24 = dma.hbm_to_vmem [thread:$0]  %s292_s0, 256, %s19_s19, [#allocation3], %s207_s28, %s207_s28, %s208_s29  }
  0x12   :  { %202 = dma.done.wait [#allocation3], 256  }
  0x13   :  { %203 = vsyncadd [#allocation3], 4294967040  ;;  %vm36_vm0 = vcmask 1043456   ;;  %v32_v0 = vld [vmem:[#allocation2] sm:$0xff]  ;;  %v54_v1 = vld [vmem:[#allocation2 + $0x8] sm:$0xff]  ;;  %v209_v20 = vmov 0   ;;  %v93_v41 = vlaneseq }
  0x14   :  { %v34_v2 = vcombine.high %v32_v0, %v32_v0  ;;  %v37_v3 = vsel %vm36_vm0, %v32_v0, 0.0  ;;  %v43_v4 = vmul.f32 %v32_v0, %v32_v0  ;;  %v56_v5 = vcombine.high %v54_v1, %v54_v1  ;;  %152 = vset.pattern.permute.xlu0 %v209_v20  ;;  %153 = vset.pattern.permute.xlu1 %v209_v20  ;;  %v79_v33 = vld [vmem:[%s293_s1] sm:$0xf]  ;;  %s211_s1 = smov [#allocation5]  }
  0x15   :  { %v58_v6 = vsel %vm36_vm0, %v54_v1, 0.0  ;;  %v64_v7 = vmul.f32 %v54_v1, %v54_v1  ;;  %vm118_vm1 = vcmask 3072   ;;  %v83_v36 = vld [vmem:[%s294_s2] sm:$0xf]  ;;  %v210_v39 = vmov 839922192  }
  0x16   :  { %v38_v8 = vsel %vm36_vm0, %v34_v2, 0.0  ;;  %v45_v9 = vcombine.high %v43_v4, %v43_v4  ;;  %v47_v10 = vsel %vm36_vm0, %v43_v4, 0.0  ;;  %v59_v11 = vsel %vm36_vm0, %v56_v5, 0.0 }
  0x17   :  { %v39_v12 = vadd.f32 %v38_v8, %v37_v3  ;;  %v66_v13 = vcombine.high %v64_v7, %v64_v7  ;;  %v68_v15 = vsel %vm36_vm0, %v64_v7, 0.0  ;;  %v60_v17 = vadd.f32 %v59_v11, %v58_v6 }
  0x18   :  { %v48_v14 = vsel %vm36_vm0, %v45_v9, 0.0  ;;  %v91_v40 = vunpack.c.l.s4 %v210_v39  ;;  %v94_v43 = vshrl.u32 %v93_v41, 7 }
  0x19   :  { %40 = vadd.xlane.f32.xlu0 %v39_v12  ;;  %v49_v16 = vadd.f32 %v48_v14, %v47_v10  ;;  %v69_v18 = vsel %vm36_vm0, %v66_v13, 0.0 }
  0x1a   :  { %v70_v19 = vadd.f32 %v69_v18, %v68_v15  ;;  %v92_v42 = vunpack.c.0.s8 %v91_v40 }
  0x1b   :  { %50 = vadd.xlane.f32.xlu1 %v49_v16 }
  0x1c   :  { %v95_v44 = vsub.s32 %v92_v42, %v94_v43 }
  0x1d   :  { %61 = vadd.xlane.f32.xlu0 %v60_v17 }
  0x1f   :  { %71 = vadd.xlane.f32.xlu1 %v70_v19 }
  0xa6   :  { %v41_v21 = vpop.xlane.xlu0 %40 }
  0xa8   :  { %v51_v22 = vpop.xlane.xlu1 %50 }
  0xaa   :  { %v62_v23 = vpop.xlane.xlu0 %61 }
  0xab   :  { %v63_v24 = vadd.f32 %v62_v23, %v41_v21 }
  0xac   :  { %v72_v25 = vpop.xlane.xlu1 %71 }
  0xad   :  { %v74_v26 = vmul.f32 0.001953125, %v63_v24  ;;  %v73_v27 = vadd.f32 %v72_v25, %v51_v22 }
  0xaf   :  { %119 = vst.msk [vmem:[%s296_s4] sm:$0xf] %vm118_vm1, %v74_v26  ;;  %v75_v28 = vmul.f32 0.001953125, %v73_v27  ;;  %v76_v29 = vmul.f32 %v74_v26, %v74_v26  ;;  %s126_s4 = sshll.u32 %s211_s1, 4  ;;  %s127_s4 = int_to_ptr.vmem [resolvable:$true] %s126_s4 }
  0xb0   :  { %s180_s2 = scalar_lea.vmem %s127_s4, 256  ;;  %p185_p9 = scmp.lt.s32.totalorder %s127_s4, %s127_s4 }
  0xb1   :  { %v77_v30 = vsub.f32 %v75_v28, %v76_v29  ;;  %p181_p8 = scmp.ne.s32.totalorder %s127_s4, %s180_s2  ;;  %p186_p10 = scmp.lt.s32.totalorder %s180_s2, %s180_s2 }
  0xb3   :  { %v78_v31 = vmax.f32 %v77_v30, 0.0  ;;  %p187_p11 = por %p186_p10, %p185_p9 }
  0xb5   :  { %v80_v32 = vadd.f32 1e-05, %v78_v31  ;;  %120 = vst.msk [vmem:[%s297_s5] sm:$0xf] %vm118_vm1, %v78_v31  ;;  %p188_p12 = pnand %p187_p11, %p181_p8 }
  0xb7   :  { %156 = vrsqrt.f32 %v80_v32 }
  0xc1   :  { %v157_v34 = vpop.eup %156 }
  0xc2   :  { %v82_v35 = vmul.f32 %v157_v34, %v79_v33 }
  0xc4   :  { %88 = vperm.xlu0 %152, %v82_v35   ;;  %v84_v37 = vmul.f32 %v82_v35, %v74_v26 }
  0xc6   :  { %v85_v38 = vsub.f32 %v83_v36, %v84_v37 }
  0xc8   :  { %101 = vperm.xlu1 %153, %v85_v38  }
 0x143   :  { %v89_v45 = vpop.permute.xlu0 %88 }
 0x144   :  { %v96_v46 = vrot.slane %v89_v45, %v95_v44 }
 0x146   :  { %v98_v48 = vmul.f32 %v96_v46, %v32_v0  ;;  %v114_v49 = vmul.f32 %v96_v46, %v54_v1 }
 0x147   :  { %v102_v47 = vpop.permute.xlu1 %101 }
 0x148   :  { %v109_v50 = vrot.slane %v102_v47, %v95_v44 }
 0x14a   :  { %v111_v51 = vadd.f32 %v109_v50, %v98_v48  ;;  %v115_v52 = vadd.f32 %v114_v49, %v109_v50 }
 0x14c   :  { %112 = vst [vmem:[#allocation5] sm:$0xff] %v111_v51  ;;  %117 = vst [vmem:[#allocation5 + $0x8] sm:$0xff] %v115_v52 }
 0x14d   :  { %191 = shalt.err (!%p188_p12)
}
 0x14e   :  { %s192_s15 = scalar_lea.hbm %s295_s3, 256 }
 0x14f   :  { %p193_p13 = scmp.ne.s32.totalorder %s295_s3, %s192_s15  ;;  %p196_p0 = scmp.lt.u32.totalorder %s192_s15, %s295_s3 }
 0x151   :  { %p198_p1 = pnand %p196_p0, %p193_p13 }
 0x153   :  { %201 = shalt.err (!%p198_p1)
}
 0x154   :  { %132 = dma.vmem_to_hbm [thread:$0]  %s127_s4, 256, %s295_s3, [#allocation4], %s207_s28, %s207_s28, %s208_s29  }
 0x155   :  { %204 = dma.done.wait [#allocation4], 256  }
 0x156   :  { %205 = vsyncadd [#allocation4], 4294967040 }
 0x157   :  { %144 = vsyncpa [#allocation3], 1 }
 0x158   :  { %145 = vsyncpa [#allocation4], 1 }

</bundles_post_ra>
